<compile_context>
chip_gen: v6e
topology: v6e:2x2x1
jax: 0.10.0
libtpu: 0.0.40
codegen_flags: <defaults>
</compile_context>

<pallas_src>
import jax
import jax.numpy as jnp
import numpy as np
from jax import lax
from jax.experimental import pallas as pl
from jax.experimental.pallas import tpu as pltpu


def _round_up(x, m):
    return (x + m - 1) // m * m


def rnn_classifier_kernel(maxlen_ref,                       # SMEM (1,) int32 (scalar prefetch)
                          len_ref, x_ref,                   # (Bt,1) i32, (T,Bt,E) f32
                          wih_ref, whh_ref, bh_ref,         # (E,H), (H,H), (1,H)
                          wfc_ref, bfc_ref,                 # (H,F), (1,F)
                          wout_ref, bout_ref,               # (F,C), (1,C)
                          out_ref,                          # (Bt, C)
                          proj_ref):                        # VMEM scratch (T, Bt, H)
    T, Bt, E = x_ref.shape
    H = whh_ref.shape[0]

    # --- Hoisted input projection: one large MXU matmul, RNN biases folded. ---
    x2d = x_ref[...].reshape(T * Bt, E)
    proj = jnp.dot(x2d, wih_ref[...],
                   preferred_element_type=jnp.float32) + bh_ref[...]
    proj_ref[...] = proj.reshape(T, Bt, H)

    # --- Loop-invariant loads hoisted out of the time loop. ---
    whh = whh_ref[...]                         # (H, H)
    lengths = len_ref[...]                     # (Bt, 1) int32

    def step(t, h):
        h_new = jnp.tanh(proj_ref[t] +
                         jnp.dot(h, whh, preferred_element_type=jnp.float32))
        # pack_padded_sequence semantics: freeze row b once t >= length[b].
        return jnp.where(t < lengths, h_new, h)

    h0 = jnp.zeros((Bt, H), jnp.float32)
    max_len = maxlen_ref[0]                    # bound loop by longest sequence
    h_final = lax.fori_loop(0, max_len, step, h0)

    # --- Classifier head: Linear(fc) -> Linear(out), no activation between. ---
    fc = jnp.dot(h_final, wfc_ref[...],
                 preferred_element_type=jnp.float32) + bfc_ref[...]
    logits = jnp.dot(fc, wout_ref[...],
                     preferred_element_type=jnp.float32) + bout_ref[...]
    out_ref[...] = logits.astype(out_ref.dtype)


def question_classifier_rnn(text, text_lengths, params):
    """text: (B, T) int32, text_lengths: (B,) int (sorted descending, PyTorch pack convention)."""
    emb = params["embedding"]                  # (V, E)
    B, T = text.shape
    E = emb.shape[1]
    H = params["w_hh"].shape[0]
    F = params["w_fc"].shape[0]
    C = params["w_out"].shape[0]

    # --- Hardware-tile padding (sublane 8 / lane 128). ---
    B8 = _round_up(B, 8)
    b_tile = min(B8, 128)                       # amortize weight DMA for big batches
    B_pad = _round_up(B8, b_tile)
    E_pad = _round_up(E, 128)
    H_pad = _round_up(H, 128)
    F_pad = _round_up(F, 128)
    C_pad = _round_up(C, 128)

    # Embedding gather directly in time-major order + relu (no transpose copy).
    # TODO(synk): for very large vocab/emb this gather could itself be a Pallas
    # DMA-gather kernel; left in XLA here.
    x = jax.nn.relu(emb[text.T])                                    # (T, B, E)
    x = jnp.pad(x, ((0, 0), (0, B_pad - B), (0, E_pad - E)))        # (T, B_pad, E_pad)

    lengths = jnp.pad(text_lengths.astype(jnp.int32),
                      (0, B_pad - B)).reshape(B_pad, 1)             # padded rows: len=0
    max_len = jnp.max(text_lengths).astype(jnp.int32).reshape(1)    # scalar prefetch

    def pad2(w, r, c):
        return jnp.pad(w, ((0, r - w.shape[0]), (0, c - w.shape[1])))

    # Pre-transpose weights for row-vector matmuls; fold the two RNN biases.
    wih_t = pad2(params["w_ih"].T, E_pad, H_pad)                          # (E_pad, H_pad)
    whh_t = pad2(params["w_hh"].T, H_pad, H_pad)                          # (H_pad, H_pad)
    bh = pad2((params["b_ih"] + params["b_hh"]).reshape(1, H), 1, H_pad)  # (1, H_pad)
    wfc_t = pad2(params["w_fc"].T, H_pad, F_pad)                          # (H_pad, F_pad)
    bfc = pad2(params["b_fc"].reshape(1, F), 1, F_pad)                    # (1, F_pad)
    wout_t = pad2(params["w_out"].T, F_pad, C_pad)                        # (F_pad, C_pad)
    bout = pad2(params["b_out"].reshape(1, C), 1, C_pad)                  # (1, C_pad)

    nbt = B_pad // b_tile
    full = lambda shape: pl.BlockSpec(shape, lambda i, ml: (0,) * len(shape))

    out = pl.pallas_call(
        rnn_classifier_kernel,
        out_shape=jax.ShapeDtypeStruct((B_pad, C_pad), jnp.float32),
        grid_spec=pltpu.PrefetchScalarGridSpec(
            num_scalar_prefetch=1,                                  # max_len -> SMEM
            grid=(nbt,),                                            # batch tiles (parallel)
            in_specs=[
                pl.BlockSpec((b_tile, 1), lambda i, ml: (i, 0)),            # lengths
                pl.BlockSpec((T, b_tile, E_pad), lambda i, ml: (0, i, 0)),  # x (VMEM-resident)
                full((E_pad, H_pad)),                                       # W_ih^T
                full((H_pad, H_pad)),                                       # W_hh^T
                full((1, H_pad)),                                           # b_ih + b_hh
                full((H_pad, F_pad)),                                       # W_fc^T
                full((1, F_pad)),                                           # b_fc
                full((F_pad, C_pad)),                                       # W_out^T
                full((1, C_pad)),                                           # b_out
            ],
            out_specs=pl.BlockSpec((b_tile, C_pad), lambda i, ml: (i, 0)),
            scratch_shapes=[pltpu.VMEM((T, b_tile, H_pad), jnp.float32)],   # proj buffer
        ),
        compiler_params=pltpu.CompilerParams(
            dimension_semantics=("parallel",)),
    )(max_len, lengths, x, wih_t, whh_t, bh, wfc_t, bfc, wout_t, bout)

    return out[:B, :C]


def reference_forward(text, text_lengths, params):
    """Pure-JAX reference of the PyTorch forward (for correctness check)."""
    emb = params["embedding"]
    embedded = jax.nn.relu(emb[text])                    # (B, T, E)
    B, T, E = embedded.shape
    H = params["w_hh"].shape[0]
    h = jnp.zeros((B, H), jnp.float32)
    for t in range(T):
        h_new = jnp.tanh(embedded[:, t, :] @ params["w_ih"].T
                         + h @ params["w_hh"].T
                         + params["b_ih"] + params["b_hh"])
        mask = (t < text_lengths).reshape(B, 1)
        h = jnp.where(mask, h_new, h)
    fc = h @ params["w_fc"].T + params["b_fc"]
    return fc @ params["w_out"].T + params["b_out"]


if __name__ == "__main__":
    # small shapes consistent with the module
    V, E, H, F, C = 50, 32, 32, 16, 8     # vocab, emb_dim, rnn_hidden, fc_dim, num_classes
    B, T = 2, 8

    key = jax.random.PRNGKey(0)
    ks = jax.random.split(key, 10)
    params = {
        "embedding": jax.random.normal(ks[0], (V, E), jnp.float32) * 0.5,
        "w_ih": jax.random.normal(ks[1], (H, E), jnp.float32) * 0.1,
        "w_hh": jax.random.normal(ks[2], (H, H), jnp.float32) * 0.1,
        "b_ih": jax.random.normal(ks[3], (H,), jnp.float32) * 0.1,
        "b_hh": jax.random.normal(ks[4], (H,), jnp.float32) * 0.1,
        "w_fc": jax.random.normal(ks[5], (F, H), jnp.float32) * 0.1,
        "b_fc": jax.random.normal(ks[6], (F,), jnp.float32) * 0.1,
        "w_out": jax.random.normal(ks[7], (C, F), jnp.float32) * 0.1,
        "b_out": jax.random.normal(ks[8], (C,), jnp.float32) * 0.1,
    }

    text = jax.random.randint(ks[9], (B, T), 0, V, dtype=jnp.int32)
    text_lengths = jnp.array([T, 5], dtype=jnp.int32)   # sorted descending (pack_padded_sequence)

    logits = question_classifier_rnn(text, text_lengths, params)
    logits = jax.block_until_ready(logits)

    ref = reference_forward(text, text_lengths, params)
    np.testing.assert_allclose(np.asarray(logits), np.asarray(ref),
                               rtol=1e-4, atol=1e-4)
    print("KERNEL_OK")
</pallas_src>

<mosaic_0001>
module attributes {stable_mosaic.version = 11 : i64} {
  func.func @rnn_classifier_kernel(%arg0: i32, %arg1: memref<1xi32, #tpu.memory_space<smem>>, %arg2: memref<8x1xi32, #tpu.memory_space<vmem>>, %arg3: memref<8x8x128xf32, #tpu.memory_space<vmem>>, %arg4: memref<128x128xf32, #tpu.memory_space<vmem>>, %arg5: memref<128x128xf32, #tpu.memory_space<vmem>>, %arg6: memref<1x128xf32, #tpu.memory_space<vmem>>, %arg7: memref<128x128xf32, #tpu.memory_space<vmem>>, %arg8: memref<1x128xf32, #tpu.memory_space<vmem>>, %arg9: memref<128x128xf32, #tpu.memory_space<vmem>>, %arg10: memref<1x128xf32, #tpu.memory_space<vmem>>, %arg11: memref<8x128xf32, #tpu.memory_space<vmem>>, %arg12: memref<8x8x128xf32, #tpu.memory_space<vmem>>) attributes {dimension_semantics = [#tpu.dimension_semantics<parallel>], iteration_bounds = array<i64: 1>, scalar_prefetch = 1 : i64, scratch_operands = 1 : i64, tpu.core_type = #tpu.core_type<tc>, window_params = [{transform_indices = @transform_0, window_bounds = array<i64: 8, 1>}, {transform_indices = @transform_1, window_bounds = array<i64: 8, 8, 128>}, {pipeline_mode = #tpu.pipeline_mode<synchronous>, transform_indices = @transform_2, window_bounds = array<i64: 128, 128>}, {pipeline_mode = #tpu.pipeline_mode<synchronous>, transform_indices = @transform_3, window_bounds = array<i64: 128, 128>}, {pipeline_mode = #tpu.pipeline_mode<synchronous>, transform_indices = @transform_4, window_bounds = array<i64: 1, 128>}, {pipeline_mode = #tpu.pipeline_mode<synchronous>, transform_indices = @transform_5, window_bounds = array<i64: 128, 128>}, {pipeline_mode = #tpu.pipeline_mode<synchronous>, transform_indices = @transform_6, window_bounds = array<i64: 1, 128>}, {pipeline_mode = #tpu.pipeline_mode<synchronous>, transform_indices = @transform_7, window_bounds = array<i64: 128, 128>}, {pipeline_mode = #tpu.pipeline_mode<synchronous>, transform_indices = @transform_8, window_bounds = array<i64: 1, 128>}, {transform_indices = @transform_9, window_bounds = array<i64: 8, 128>}]} {
    %c0 = arith.constant 0 : index
    %c0_0 = arith.constant 0 : index
    %c0_1 = arith.constant 0 : index
    %0 = vector.load %arg3[%c0, %c0_0, %c0_1] : memref<8x8x128xf32, #tpu.memory_space<vmem>>, vector<8x8x128xf32>
    %1 = vector.shape_cast %0 : vector<8x8x128xf32> to vector<64x128xf32>
    %c0_2 = arith.constant 0 : index
    %c0_3 = arith.constant 0 : index
    %2 = vector.load %arg4[%c0_2, %c0_3] : memref<128x128xf32, #tpu.memory_space<vmem>>, vector<128x128xf32>
    %cst = arith.constant dense<0.000000e+00> : vector<64x128xf32>
    %3 = tpu.matmul %1, %2, %cst {dimension_numbers = #tpu.dot_dimension_numbers<[1], [0], [0], [1], [0, 0, 1, 1], [], []>} : vector<64x128xf32>, vector<128x128xf32>, vector<64x128xf32> -> vector<64x128xf32>
    %c0_4 = arith.constant 0 : index
    %c0_5 = arith.constant 0 : index
    %4 = vector.load %arg6[%c0_4, %c0_5] : memref<1x128xf32, #tpu.memory_space<vmem>>, vector<1x128xf32>
    %5 = vector.broadcast %4 : vector<1x128xf32> to vector<64x128xf32>
    %6 = arith.addf %3, %5 : vector<64x128xf32>
    %7 = vector.shape_cast %6 : vector<64x128xf32> to vector<8x8x128xf32>
    %c0_6 = arith.constant 0 : index
    %c0_7 = arith.constant 0 : index
    %c0_8 = arith.constant 0 : index
    %8 = vector.load %arg12[%c0_6, %c0_7, %c0_8] : memref<8x8x128xf32, #tpu.memory_space<vmem>>, vector<8x8x128xf32>
    tpu.vector_store %arg12[%c0_6, %c0_7, %c0_8], %7 {strides = array<i32>} : memref<8x8x128xf32, #tpu.memory_space<vmem>>, vector<8x8x128xf32>,
    %c0_9 = arith.constant 0 : index
    %c0_10 = arith.constant 0 : index
    %9 = vector.load %arg5[%c0_9, %c0_10] : memref<128x128xf32, #tpu.memory_space<vmem>>, vector<128x128xf32>
    %c0_11 = arith.constant 0 : index
    %c0_12 = arith.constant 0 : index
    %10 = vector.load %arg2[%c0_11, %c0_12] : memref<8x1xi32, #tpu.memory_space<vmem>>, vector<8x1xi32>
    %cst_13 = arith.constant 0.000000e+00 : f32
    %11 = vector.broadcast %cst_13 : f32 to vector<8x128xf32>
    %c0_14 = arith.constant 0 : index
    %12 = memref.load %arg1[%c0_14] : memref<1xi32, #tpu.memory_space<smem>>
    %c0_i32 = arith.constant 0 : i32
    %13 = arith.subi %12, %c0_i32 : i32
    %14 = arith.addi %c0_i32, %13 : i32
    %c1_i32 = arith.constant 1 : i32
    %15 = scf.for %arg13 = %c0_i32 to %14 step %c1_i32 iter_args(%arg14 = %11) -> (vector<8x128xf32>)  : i32 {
      %27 = arith.index_cast %arg13 : i32 to index
      %c0_27 = arith.constant 0 : index
      %c0_28 = arith.constant 0 : index
      %28 = vector.load %arg12[%27, %c0_27, %c0_28] : memref<8x8x128xf32, #tpu.memory_space<vmem>>, vector<1x8x128xf32>
      %29 = vector.shape_cast %28 : vector<1x8x128xf32> to vector<8x128xf32>
      %cst_29 = arith.constant dense<0.000000e+00> : vector<8x128xf32>
      %30 = tpu.matmul %arg14, %9, %cst_29 {dimension_numbers = #tpu.dot_dimension_numbers<[1], [0], [0], [1], [0, 0, 1, 1], [], []>} : vector<8x128xf32>, vector<128x128xf32>, vector<8x128xf32> -> vector<8x128xf32>
      %31 = arith.addf %29, %30 : vector<8x128xf32>
      %32 = math.tanh %31 : vector<8x128xf32>
      %33 = vector.broadcast %arg13 : i32 to vector<8x1xi32>
      %34 = arith.cmpi slt, %33, %10 : vector<8x1xi32>
      %35 = vector.shape_cast %34 : vector<8x1xi1> to vector<8x1xi1>
      %36 = vector.broadcast %35 : vector<8x1xi1> to vector<8x128xi1>
      %37 = arith.select %36, %32, %arg14 : vector<8x128xi1>, vector<8x128xf32>
      scf.yield %37 : vector<8x128xf32>
    }
    %c0_15 = arith.constant 0 : index
    %c0_16 = arith.constant 0 : index
    %16 = vector.load %arg7[%c0_15, %c0_16] : memref<128x128xf32, #tpu.memory_space<vmem>>, vector<128x128xf32>
    %cst_17 = arith.constant dense<0.000000e+00> : vector<8x128xf32>
    %17 = tpu.matmul %15, %16, %cst_17 {dimension_numbers = #tpu.dot_dimension_numbers<[1], [0], [0], [1], [0, 0, 1, 1], [], []>} : vector<8x128xf32>, vector<128x128xf32>, vector<8x128xf32> -> vector<8x128xf32>
    %c0_18 = arith.constant 0 : index
    %c0_19 = arith.constant 0 : index
    %18 = vector.load %arg8[%c0_18, %c0_19] : memref<1x128xf32, #tpu.memory_space<vmem>>, vector<1x128xf32>
    %19 = vector.broadcast %18 : vector<1x128xf32> to vector<8x128xf32>
    %20 = arith.addf %17, %19 : vector<8x128xf32>
    %c0_20 = arith.constant 0 : index
    %c0_21 = arith.constant 0 : index
    %21 = vector.load %arg9[%c0_20, %c0_21] : memref<128x128xf32, #tpu.memory_space<vmem>>, vector<128x128xf32>
    %cst_22 = arith.constant dense<0.000000e+00> : vector<8x128xf32>
    %22 = tpu.matmul %20, %21, %cst_22 {dimension_numbers = #tpu.dot_dimension_numbers<[1], [0], [0], [1], [0, 0, 1, 1], [], []>} : vector<8x128xf32>, vector<128x128xf32>, vector<8x128xf32> -> vector<8x128xf32>
    %c0_23 = arith.constant 0 : index
    %c0_24 = arith.constant 0 : index
    %23 = vector.load %arg10[%c0_23, %c0_24] : memref<1x128xf32, #tpu.memory_space<vmem>>, vector<1x128xf32>
    %24 = vector.broadcast %23 : vector<1x128xf32> to vector<8x128xf32>
    %25 = arith.addf %22, %24 : vector<8x128xf32>
    %c0_25 = arith.constant 0 : index
    %c0_26 = arith.constant 0 : index
    %26 = vector.load %arg11[%c0_25, %c0_26] : memref<8x128xf32, #tpu.memory_space<vmem>>, vector<8x128xf32>
    tpu.vector_store %arg11[%c0_25, %c0_26], %25 {strides = array<i32>} : memref<8x128xf32, #tpu.memory_space<vmem>>, vector<8x128xf32>,
    return
  }
  func.func @transform_0(%arg0: i32, %arg1: memref<1xi32, #tpu.memory_space<smem>>) -> (i32, i32) {
    %c0_i32 = arith.constant 0 : i32
    %c0_i32_0 = arith.constant 0 : i32
    return %arg0, %c0_i32 : i32, i32
  }
  func.func @transform_1(%arg0: i32, %arg1: memref<1xi32, #tpu.memory_space<smem>>) -> (i32, i32, i32) {
    %c0_i32 = arith.constant 0 : i32
    %c0_i32_0 = arith.constant 0 : i32
    %c0_i32_1 = arith.constant 0 : i32
    return %c0_i32, %arg0, %c0_i32_0 : i32, i32, i32
  }
  func.func @transform_2(%arg0: i32, %arg1: memref<1xi32, #tpu.memory_space<smem>>) -> (i32, i32) {
    %c0_i32 = arith.constant 0 : i32
    %c0_i32_0 = arith.constant 0 : i32
    %c0_i32_1 = arith.constant 0 : i32
    return %c0_i32, %c0_i32_0 : i32, i32
  }
  func.func @transform_3(%arg0: i32, %arg1: memref<1xi32, #tpu.memory_space<smem>>) -> (i32, i32) {
    %c0_i32 = arith.constant 0 : i32
    %c0_i32_0 = arith.constant 0 : i32
    %c0_i32_1 = arith.constant 0 : i32
    return %c0_i32, %c0_i32_0 : i32, i32
  }
  func.func @transform_4(%arg0: i32, %arg1: memref<1xi32, #tpu.memory_space<smem>>) -> (i32, i32) {
    %c0_i32 = arith.constant 0 : i32
    %c0_i32_0 = arith.constant 0 : i32
    %c0_i32_1 = arith.constant 0 : i32
    return %c0_i32, %c0_i32_0 : i32, i32
  }
  func.func @transform_5(%arg0: i32, %arg1: memref<1xi32, #tpu.memory_space<smem>>) -> (i32, i32) {
    %c0_i32 = arith.constant 0 : i32
    %c0_i32_0 = arith.constant 0 : i32
    %c0_i32_1 = arith.constant 0 : i32
    return %c0_i32, %c0_i32_0 : i32, i32
  }
  func.func @transform_6(%arg0: i32, %arg1: memref<1xi32, #tpu.memory_space<smem>>) -> (i32, i32) {
    %c0_i32 = arith.constant 0 : i32
    %c0_i32_0 = arith.constant 0 : i32
    %c0_i32_1 = arith.constant 0 : i32
    return %c0_i32, %c0_i32_0 : i32, i32
  }
  func.func @transform_7(%arg0: i32, %arg1: memref<1xi32, #tpu.memory_space<smem>>) -> (i32, i32) {
    %c0_i32 = arith.constant 0 : i32
    %c0_i32_0 = arith.constant 0 : i32
    %c0_i32_1 = arith.constant 0 : i32
    return %c0_i32, %c0_i32_0 : i32, i32
  }
  func.func @transform_8(%arg0: i32, %arg1: memref<1xi32, #tpu.memory_space<smem>>) -> (i32, i32) {
    %c0_i32 = arith.constant 0 : i32
    %c0_i32_0 = arith.constant 0 : i32
    %c0_i32_1 = arith.constant 0 : i32
    return %c0_i32, %c0_i32_0 : i32, i32
  }
  func.func @transform_9(%arg0: i32, %arg1: memref<1xi32, #tpu.memory_space<smem>>) -> (i32, i32) {
    %c0_i32 = arith.constant 0 : i32
    %c0_i32_0 = arith.constant 0 : i32
    return %arg0, %c0_i32 : i32, i32
  }
}

</mosaic_0001>

<bundles_post_ra>
// kernel: tpu_custom_call.1
= control target key start
LH: loop header
LB: loop body
LE: loop exit
PB: predicated region body
PF: predicated region fallthrough
CT: control target
= control target key end

     0   :  { %16 = vsyncpa [#allocation6], 0  ;;  %s1249_s0 = inlined_call_operand.<no memory space> [shape: s32[1], index: 0, kind: input, shape index: {}]   ;;  %s1250_s1 = inlined_call_operand.vmem [shape: s32[8,1], index: 1, kind: input, shape index: {}]   ;;  %s1251_s2 = inlined_call_operand.hbm [shape: f32[8,8,128], index: 2, kind: input, shape index: {}]   ;;  %s1252_s3 = inlined_call_operand.hbm [shape: f32[128,128], index: 3, kind: input, shape index: {}]   ;;  %s1253_s4 = inlined_call_operand.hbm [shape: f32[128,128], index: 4, kind: input, shape index: {}]   ;;  %s1254_s5 = inlined_call_operand.vmem [shape: f32[1,128], index: 5, kind: input, shape index: {}]   ;;  %s1255_s6 = inlined_call_operand.hbm [shape: f32[128,128], index: 6, kind: input, shape index: {}]   ;;  %s1256_s7 = inlined_call_operand.vmem [shape: f32[1,128], index: 7, kind: input, shape index: {}]   ;;  %s1257_s8 = inlined_call_operand.hbm [shape: f32[128,128], index: 8, kind: input, shape index: {}]   ;;  %s1258_s9 = inlined_call_operand.vmem [shape: f32[1,128], index: 9, kind: input, shape index: {}]   ;;  %s1259_s10 = inlined_call_operand.hbm [shape: f32[8,128], index: 10, kind: output, shape index: {}]  }
   0x1   :  { %17 = vsyncpa [#allocation9], 0 }
   0x2   :  { %18 = vsyncpa [#allocation12], 0 }
   0x3   :  { %19 = vsyncpa [#allocation7], 0  ;;  %s1022_s13 = smov [#allocation8]   ;;  %s1023_s15 = smov [#allocation11]  }
   0x4   :  { %s39_s14 = sshll.u32 %s1022_s13, 4  ;;  %s65_s16 = sshll.u32 %s1023_s15, 4  ;;  %s40_s14 = int_to_ptr.vmem [resolvable:$true] %s39_s14  ;;  %s66_s16 = int_to_ptr.vmem [resolvable:$true] %s65_s16 }
   0x5   :  { %s878_s17 = scalar_lea.vmem %s40_s14, 2048  ;;  %p883_p1 = scmp.lt.s32.totalorder %s40_s14, %s40_s14 }
   0x6   :  { %p879_p0 = scmp.ne.s32.totalorder %s40_s14, %s878_s17  ;;  %p884_p2 = scmp.lt.s32.totalorder %s878_s17, %s878_s17 }
   0x8   :  { %p885_p3 = por %p884_p2, %p883_p1 }
   0xa   :  { %p886_p4 = pnand %p885_p3, %p879_p0 }
   0xc   :  { %889 = shalt.err (!%p886_p4)
}
   0xd   :  { %s1024_s18 = smov 128   ;;  %s1025_s19 = smov 8  }
   0xe   :  { %45 = dma.hbm_to_vmem [thread:$0]  %s1252_s3, 2048, %s40_s14, [#allocation9], %s1024_s18, %s1024_s18, %s1025_s19  }
   0xf   :  { %s898_s22 = scalar_lea.vmem %s66_s16, 2048  ;;  %p903_p6 = scmp.lt.s32.totalorder %s66_s16, %s66_s16 }
  0x10   :  { %p899_p5 = scmp.ne.s32.totalorder %s66_s16, %s898_s22  ;;  %p904_p7 = scmp.lt.s32.totalorder %s898_s22, %s898_s22 }
  0x12   :  { %p905_p8 = por %p904_p7, %p903_p6 }
  0x14   :  { %p906_p9 = pnand %p905_p8, %p899_p5 }
  0x16   :  { %909 = shalt.err (!%p906_p9)
}
  0x17   :  { %71 = dma.hbm_to_vmem [thread:$0]  %s1255_s6, 2048, %s66_s16, [#allocation12], %s1024_s18, %s1024_s18, %s1025_s19  }
  0x18   :  { %s1026_s25 = smov [#allocation5]   ;;  %s1027_s27 = smov [#allocation10]  }
  0x19   :  { %s27_s26 = sshll.u32 %s1026_s25, 4  ;;  %s51_s28 = sshll.u32 %s1027_s27, 4  ;;  %s28_s26 = int_to_ptr.vmem [resolvable:$true] %s27_s26  ;;  %s52_s28 = int_to_ptr.vmem [resolvable:$true] %s51_s28 }
  0x1a   :  { %s918_s3 = scalar_lea.vmem %s28_s26, 1024  ;;  %p923_p11 = scmp.lt.s32.totalorder %s28_s26, %s28_s26 }
  0x1b   :  { %p919_p10 = scmp.ne.s32.totalorder %s28_s26, %s918_s3  ;;  %p924_p12 = scmp.lt.s32.totalorder %s918_s3, %s918_s3 }
  0x1d   :  { %p925_p13 = por %p924_p12, %p923_p11 }
  0x1f   :  { %p926_p0 = pnand %p925_p13, %p919_p10 }
  0x21   :  { %929 = shalt.err (!%p926_p0)
}
  0x22   :  { %33 = dma.hbm_to_vmem [thread:$0]  %s1251_s2, 1024, %s28_s26, [#allocation6], %s1024_s18, %s1024_s18, %s1025_s19  }
  0x23   :  { %s938_s6 = scalar_lea.vmem %s52_s28, 2048  ;;  %p943_p2 = scmp.lt.s32.totalorder %s52_s28, %s52_s28 }
  0x24   :  { %p939_p1 = scmp.ne.s32.totalorder %s52_s28, %s938_s6  ;;  %p944_p3 = scmp.lt.s32.totalorder %s938_s6, %s938_s6 }
  0x26   :  { %p945_p4 = por %p944_p3, %p943_p2 }
  0x28   :  { %p946_p5 = pnand %p945_p4, %p939_p1 }
  0x2a   :  { %949 = shalt.err (!%p946_p5)
}
  0x2b   :  { %57 = dma.hbm_to_vmem [thread:$0]  %s1253_s4, 2048, %s52_s28, [#allocation9], %s1024_s18, %s1024_s18, %s1025_s19  }
  0x2c   :  { %s1028_s13 = smov [#allocation13]  }
  0x2d   :  { %s79_s14 = sshll.u32 %s1028_s13, 4  ;;  %s80_s14 = int_to_ptr.vmem [resolvable:$true] %s79_s14 }
  0x2e   :  { %s958_s15 = scalar_lea.vmem %s80_s14, 2048  ;;  %p963_p7 = scmp.lt.s32.totalorder %s80_s14, %s80_s14 }
  0x2f   :  { %p959_p6 = scmp.ne.s32.totalorder %s80_s14, %s958_s15  ;;  %p964_p8 = scmp.lt.s32.totalorder %s958_s15, %s958_s15 }
  0x31   :  { %p965_p9 = por %p964_p8, %p963_p7 }
  0x33   :  { %p966_p10 = pnand %p965_p9, %p959_p6 }
  0x35   :  { %969 = shalt.err (!%p966_p10)
}
  0x36   :  { %85 = dma.hbm_to_vmem [thread:$0]  %s1257_s8, 2048, %s80_s14, [#allocation12], %s1024_s18, %s1024_s18, %s1025_s19  }
  0x37   :  { %1002 = dma.done.wait [#allocation6], 1024  }
  0x38   :  { %1003 = vsyncadd [#allocation6], 4294966272 }
  0x39   :  { %1004 = dma.done.wait [#allocation9], 4096  }
  0x3a   :  { %1005 = vsyncadd [#allocation9], 4294963200 }
  0x3b   :  { %1006 = dma.done.wait [#allocation12], 4096  }
  0x3c   :  { %1007 = vsyncadd [#allocation12], 4294963200  ;;  %v1120_v0 = vld [vmem:[#allocation10] sm:$0xff]  ;;  %v1122_v1 = vld [vmem:[#allocation10 + $0x8] sm:$0xff]  ;;  %p570_p11 = scmp.le.s32.totalorder %s1249_s0, 0  ;;  %v1163_v58 = vmov 0.0  }
  0x3d   :  { %v1124_v2 = vld [vmem:[#allocation10 + $0x10] sm:$0xff]  ;;  %v1126_v3 = vld [vmem:[#allocation10 + $0x18] sm:$0xff]  ;;  %v1128_v4 = vld [vmem:[#allocation10 + $0x20] sm:$0xff]  ;;  %s1167_s19 = smov (!%p570_p11), 0  }
  0x3e   :  { %v1130_v5 = vld [vmem:[#allocation10 + $0x28] sm:$0xff]  ;;  %v1132_v6 = vld [vmem:[#allocation10 + $0x30] sm:$0xff]  ;;  %v1134_v7 = vld [vmem:[#allocation10 + $0x38] sm:$0xff] }
  0x3f   :  { %v1136_v8 = vld [vmem:[#allocation10 + $0x40] sm:$0xff]  ;;  %v1138_v9 = vld [vmem:[#allocation10 + $0x48] sm:$0xff]  ;;  %v1140_v10 = vld [vmem:[#allocation10 + $0x50] sm:$0xff] }
  0x40   :  { %v1142_v11 = vld [vmem:[#allocation10 + $0x58] sm:$0xff]  ;;  %v1144_v12 = vld [vmem:[#allocation10 + $0x60] sm:$0xff]  ;;  %v1146_v13 = vld [vmem:[#allocation10 + $0x68] sm:$0xff] }
  0x41   :  { %v1148_v14 = vld [vmem:[#allocation10 + $0x70] sm:$0xff]  ;;  %v1150_v15 = vld [vmem:[#allocation10 + $0x78] sm:$0xff]  ;;  %v1155_v16 = vld [vmem:[%s1250_s1] sm:$0xff] }
  0x42   :  { %v126_v17 = vld [vmem:[#allocation8 + $0x78] sm:$0xff]  ;;  %v125_v18 = vld [vmem:[#allocation8 + $0x70] sm:$0xff]  ;;  %v124_v19 = vld [vmem:[#allocation8 + $0x68] sm:$0xff] }
  0x43   :  { %649 = vmatprep.subr.mxu0 %v126_v17  ;;  %798 = vmatprep.subr.mxu1 %v126_v17  ;;  %v123_v20 = vld [vmem:[#allocation8 + $0x60] sm:$0xff]  ;;  %v122_v21 = vld [vmem:[#allocation8 + $0x58] sm:$0xff]  ;;  %v121_v22 = vld [vmem:[#allocation8 + $0x50] sm:$0xff] }
  0x44   :  { %650 = vmatpush3.msra.mxu0 %v126_v17  ;;  %814 = vmatpush3.msra.mxu1 %v126_v17  ;;  %v120_v23 = vld [vmem:[#allocation8 + $0x48] sm:$0xff]  ;;  %v119_v24 = vld [vmem:[#allocation8 + $0x40] sm:$0xff]  ;;  %v118_v25 = vld [vmem:[#allocation8 + $0x38] sm:$0xff] }
  0x45   :  { %651 = vmatprep.subr.mxu0 %v125_v18  ;;  %799 = vmatprep.subr.mxu1 %v125_v18  ;;  %v117_v26 = vld [vmem:[#allocation8 + $0x30] sm:$0xff]  ;;  %v116_v27 = vld [vmem:[#allocation8 + $0x28] sm:$0xff]  ;;  %v115_v28 = vld [vmem:[#allocation8 + $0x20] sm:$0xff] }
  0x46   :  { %652 = vmatpush3.msra.mxu0 %v125_v18  ;;  %815 = vmatpush3.msra.mxu1 %v125_v18  ;;  %v114_v29 = vld [vmem:[#allocation8 + $0x18] sm:$0xff]  ;;  %v113_v30 = vld [vmem:[#allocation8 + $0x10] sm:$0xff]  ;;  %v112_v31 = vld [vmem:[#allocation8 + $0x8] sm:$0xff] }
  0x47   :  { %653 = vmatprep.subr.mxu0 %v124_v19  ;;  %800 = vmatprep.subr.mxu1 %v124_v19  ;;  %v111_v32 = vld [vmem:[#allocation8] sm:$0xff]  ;;  %v104_v35 = vld [vmem:[#allocation5 + $0x8] sm:$0xff]  ;;  %v105_v37 = vld [vmem:[#allocation5 + $0x10] sm:$0xff] }
  0x48   :  { %654 = vmatpush3.msra.mxu0 %v124_v19  ;;  %816 = vmatpush3.msra.mxu1 %v124_v19  ;;  %v103_v33 = vld [vmem:[#allocation5] sm:$0xff]  ;;  %v108_v36 = vld [vmem:[#allocation5 + $0x28] sm:$0xff]  ;;  %v109_v38 = vld [vmem:[#allocation5 + $0x30] sm:$0xff] }
  0x49   :  { %655 = vmatprep.subr.mxu0 %v123_v20  ;;  %801 = vmatprep.subr.mxu1 %v123_v20  ;;  %v107_v34 = vld [vmem:[#allocation5 + $0x20] sm:$0xff]  ;;  %v106_v39 = vld [vmem:[#allocation5 + $0x18] sm:$0xff] }
  0x4a   :  { %656 = vmatpush3.msra.mxu0 %v123_v20  ;;  %817 = vmatpush3.msra.mxu1 %v123_v20  ;;  %v110_v40 = vld [vmem:[#allocation5 + $0x38] sm:$0xff]  ;;  %v569_v41 = vld [vmem:[%s1254_s5] ss:$0 sm:$0xff] }
  0x4b   :  { %657 = vmatprep.subr.mxu0 %v122_v21  ;;  %802 = vmatprep.subr.mxu1 %v122_v21 }
  0x4c   :  { %658 = vmatpush3.msra.mxu0 %v122_v21  ;;  %818 = vmatpush3.msra.mxu1 %v122_v21 }
  0x4d   :  { %659 = vmatprep.subr.mxu0 %v121_v22  ;;  %803 = vmatprep.subr.mxu1 %v121_v22 }
  0x4e   :  { %660 = vmatpush3.msra.mxu0 %v121_v22  ;;  %819 = vmatpush3.msra.mxu1 %v121_v22 }
  0x4f   :  { %661 = vmatprep.subr.mxu0 %v120_v23  ;;  %804 = vmatprep.subr.mxu1 %v120_v23 }
  0x50   :  { %662 = vmatpush3.msra.mxu0 %v120_v23  ;;  %820 = vmatpush3.msra.mxu1 %v120_v23 }
  0x51   :  { %663 = vmatprep.subr.mxu0 %v119_v24  ;;  %805 = vmatprep.subr.mxu1 %v119_v24 }
  0x52   :  { %664 = vmatpush3.msra.mxu0 %v119_v24  ;;  %821 = vmatpush3.msra.mxu1 %v119_v24 }
  0x53   :  { %665 = vmatprep.subr.mxu0 %v118_v25  ;;  %806 = vmatprep.subr.mxu1 %v118_v25 }
  0x54   :  { %666 = vmatpush3.msra.mxu0 %v118_v25  ;;  %822 = vmatpush3.msra.mxu1 %v118_v25 }
  0x55   :  { %667 = vmatprep.subr.mxu0 %v117_v26  ;;  %807 = vmatprep.subr.mxu1 %v117_v26 }
  0x56   :  { %668 = vmatpush3.msra.mxu0 %v117_v26  ;;  %823 = vmatpush3.msra.mxu1 %v117_v26 }
  0x57   :  { %669 = vmatprep.subr.mxu0 %v116_v27  ;;  %808 = vmatprep.subr.mxu1 %v116_v27 }
  0x58   :  { %670 = vmatpush3.msra.mxu0 %v116_v27  ;;  %824 = vmatpush3.msra.mxu1 %v116_v27 }
  0x59   :  { %671 = vmatprep.subr.mxu0 %v115_v28  ;;  %809 = vmatprep.subr.mxu1 %v115_v28 }
  0x5a   :  { %672 = vmatpush3.msra.mxu0 %v115_v28  ;;  %825 = vmatpush3.msra.mxu1 %v115_v28 }
  0x5b   :  { %673 = vmatprep.subr.mxu0 %v114_v29  ;;  %810 = vmatprep.subr.mxu1 %v114_v29 }
  0x5c   :  { %674 = vmatpush3.msra.mxu0 %v114_v29  ;;  %826 = vmatpush3.msra.mxu1 %v114_v29 }
  0x5d   :  { %675 = vmatprep.subr.mxu0 %v113_v30  ;;  %811 = vmatprep.subr.mxu1 %v113_v30 }
  0x5e   :  { %676 = vmatpush3.msra.mxu0 %v113_v30  ;;  %827 = vmatpush3.msra.mxu1 %v113_v30 }
  0x5f   :  { %677 = vmatprep.subr.mxu0 %v112_v31  ;;  %812 = vmatprep.subr.mxu1 %v112_v31 }
  0x60   :  { %678 = vmatpush3.msra.mxu0 %v112_v31  ;;  %828 = vmatpush3.msra.mxu1 %v112_v31 }
  0x61   :  { %679 = vmatprep.subr.mxu0 %v111_v32  ;;  %813 = vmatprep.subr.mxu1 %v111_v32 }
  0x62   :  { %680 = vmatpush3.msra.mxu0 %v111_v32  ;;  %829 = vmatpush3.msra.mxu1 %v111_v32 }
  0x63   :  { %681 = vmatprep.mubr.f32.mxu0 %v103_v33  ;;  %687 = vmatprep.mubr.f32.mxu1 %v107_v34 }
  0x64   :  { %682 = vmatmul.mubr.f32.vlgmr.msra.gmra.mxu0 %v104_v35  ;;  %688 = vmatmul.mubr.f32.vlgmr.msra.gmra.mxu1 %v108_v36 }
  0x65   :  { %684 = vmatprep.mubr.f32.mxu0 %v105_v37  ;;  %690 = vmatprep.mubr.f32.mxu1 %v109_v38 }
  0x68   :  { %685 = vmatmul.mubr.f32.gmra.mxu0 %v106_v39  ;;  %691 = vmatmul.mubr.f32.gmra.mxu1 %v110_v40 }
 0x124   :  { %v683_v42 = vpop.f32.mrf.mxu0  ;;  %v689_v43 = vpop.f32.mrf.mxu1 }
 0x125   :  { %v206_v44 = vadd.f32 %v683_v42, %v569_v41  ;;  %v226_v45 = vadd.f32 %v689_v43, %v569_v41 }
 0x126   :  { %v200_v46 = vpop.f32.mrf.mxu0  ;;  %v220_v47 = vpop.f32.mrf.mxu1 }
 0x127   :  { %240 = vst [vmem:[#allocation2 + $0x8] sm:$0xff] %v206_v44  ;;  %244 = vst [vmem:[#allocation2 + $0x28] sm:$0xff] %v226_v45  ;;  %v201_v48 = vadd.f32 %v569_v41, %v200_v46  ;;  %v221_v49 = vadd.f32 %v569_v41, %v220_v47 }
 0x128   :  { %v686_v50 = vpop.f32.mrf.mxu0  ;;  %v692_v51 = vpop.f32.mrf.mxu1 }
 0x129   :  { %239 = vst [vmem:[#allocation2] sm:$0xff] %v201_v48  ;;  %243 = vst [vmem:[#allocation2 + $0x20] sm:$0xff] %v221_v49  ;;  %v216_v52 = vadd.f32 %v686_v50, %v569_v41  ;;  %v236_v53 = vadd.f32 %v692_v51, %v569_v41  ;;  %564 = sbr.rel (%p570_p11) target bundleno = 547 (0x223), region = 78 }
 0x12a   :  { %v210_v54 = vpop.f32.mrf.mxu0  ;;  %v230_v55 = vpop.f32.mrf.mxu1 }
 0x12b   :  { %242 = vst [vmem:[#allocation2 + $0x18] sm:$0xff] %v216_v52  ;;  %246 = vst [vmem:[#allocation2 + $0x38] sm:$0xff] %v236_v53  ;;  %v211_v56 = vadd.f32 %v569_v41, %v210_v54  ;;  %v231_v57 = vadd.f32 %v569_v41, %v230_v55 }
 0x12d   :  { %241 = vst [vmem:[#allocation2 + $0x10] sm:$0xff] %v211_v56  ;;  %245 = vst [vmem:[#allocation2 + $0x30] sm:$0xff] %v231_v57 }
 0x12e   :  { %v1165_v59 = vmov 0.0  }
 0x12f LB: > { %v1029_v60 = vmov 0.0   ;;  %vm1030_vm0 = vmmov 0   ;;  %v1031_v61 = vmov 0   ;;  %v347_v62 = vstv %s1016_s19  ;;  %s571_s20 = sshll.u32 %s1016_s19, 3  ;;  %s268_s19 = sadd.s32 1, %s1016_s19   ;;  %s1016_s19 = sphi %s1167_s19, %s268_s19   ;;  %v1012_v59 = vphi %v1165_v59, %v1260_v59  }
 0x130   : > { %693 = vmatprep.subr.mxu0 %v1029_v60  ;;  %725 = vmatprep.mubr.msk.f32.mxu0 %vm1030_vm0, %v1029_v60  ;;  %vm348_vm1 = vcmp.lt.s32.totalorder %v347_v62, %v1155_v16  ;;  %s273_s21 = scalar_lea.vmem [#allocation2], %s571_s20  ;;  %p267_p12 = scmp.ge.s32.totalorder %s268_s19, %s1249_s0 }
 0x131   : > { %694 = vmatpush3.msra.mxu0 %v1150_v15  ;;  %867 = vset.pattern.permute.xlu0 %v1031_v61  ;;  %v349_v63 = vsel %vm348_vm1, 1, %v1031_v61 }
 0x132   : > { %695 = vmatprep.subr.mxu0 %v1029_v60  ;;  %351 = vperm.xlu0 %867, %v349_v63  }
 0x133   : > { %696 = vmatpush3.msra.mxu0 %v1148_v14 }
 0x134   : > { %697 = vmatprep.subr.mxu0 %v1029_v60  ;;  %v274_v17 = vld [vmem:[%s273_s21] sm:$0xff] }
 0x135   : > { %698 = vmatpush3.msra.mxu0 %v1146_v13 }
 0x136   : > { %699 = vmatprep.subr.mxu0 %v1029_v60 }
 0x137   : > { %700 = vmatpush3.msra.mxu0 %v1144_v12 }
 0x138   : > { %701 = vmatprep.subr.mxu0 %v1029_v60 }
 0x139   : > { %702 = vmatpush3.msra.mxu0 %v1142_v11 }
 0x13a   : > { %703 = vmatprep.subr.mxu0 %v1029_v60 }
 0x13b   : > { %704 = vmatpush3.msra.mxu0 %v1140_v10 }
 0x13c   : > { %705 = vmatprep.subr.mxu0 %v1029_v60 }
 0x13d   : > { %706 = vmatpush3.msra.mxu0 %v1138_v9 }
 0x13e   : > { %707 = vmatprep.subr.mxu0 %v1029_v60 }
 0x13f   : > { %708 = vmatpush3.msra.mxu0 %v1136_v8 }
 0x140   : > { %709 = vmatprep.subr.mxu0 %v1029_v60 }
 0x141   : > { %710 = vmatpush3.msra.mxu0 %v1134_v7 }
 0x142   : > { %711 = vmatprep.subr.mxu0 %v1029_v60 }
 0x143   : > { %712 = vmatpush3.msra.mxu0 %v1132_v6 }
 0x144   : > { %713 = vmatprep.subr.mxu0 %v1029_v60 }
 0x145   : > { %714 = vmatpush3.msra.mxu0 %v1130_v5 }
 0x146   : > { %715 = vmatprep.subr.mxu0 %v1029_v60 }
 0x147   : > { %716 = vmatpush3.msra.mxu0 %v1128_v4 }
 0x148   : > { %717 = vmatprep.subr.mxu0 %v1029_v60 }
 0x149   : > { %718 = vmatpush3.msra.mxu0 %v1126_v3 }
 0x14a   : > { %719 = vmatprep.subr.mxu0 %v1029_v60 }
 0x14b   : > { %720 = vmatpush3.msra.mxu0 %v1124_v2 }
 0x14c   : > { %721 = vmatprep.subr.mxu0 %v1029_v60 }
 0x14d   : > { %722 = vmatpush3.msra.mxu0 %v1122_v1 }
 0x14e   : > { %723 = vmatprep.subr.mxu0 %v1029_v60 }
 0x14f   : > { %724 = vmatpush3.msra.mxu0 %v1120_v0 }
 0x150   : > { %726 = vmatmul.mubr.f32.vlgmr.msra.gmra.mxu0 %v1012_v59 }
 0x1ad   : > { %v352_v21 = vpop.permute.xlu0 %351 }
 0x1ae   : > { %vm353_vm2 = vcmp.eq.s32.totalorder %v352_v21, 1 }
 0x210   : > { %v341_v18 = vpop.f32.mrf.mxu0 }
 0x211   : > { %v345_v19 = vadd.f32 %v341_v18, %v274_v17 }
 0x212   : > { %v727_v20 = vpop.f32.mrf.mxu0 }
 0x213   : > { %868 = vtanh.f32 %v345_v19 }
 0x21e   :  { %270 = sbr.rel (!%p267_p12) target bundleno = 303 (0x12f), region = 84 }
 0x220   : > { %v869_v22 = vpop.eup %868 }
 0x221   : > { %v354_v23 = vsel %vm353_vm2, %v869_v22, %v1012_v59  }
 0x222   : > { %v1260_v59 = vmov %v354_v23  ;;  %v1261_v58 = vmov (%p267_p12), %v354_v23 }
 0x223 PF:  { %v370_v24 = vld [vmem:[#allocation11 + $0x78] sm:$0xff]  ;;  %v1032_v25 = vmov 0.0   ;;  %v369_v26 = vld [vmem:[#allocation11 + $0x70] sm:$0xff]  ;;  %vm1033_vm3 = vmmov 0   ;;  %v368_v0 = vld [vmem:[#allocation11 + $0x68] sm:$0xff]  ;;  %s1034_s27 = smov [#allocation14]   ;;  %v1020_v58 = vphi %v1163_v58, %v1261_v58  }
 0x224   :  { %728 = vmatprep.subr.mxu0 %v1032_v25  ;;  %760 = vmatprep.mubr.msk.f32.mxu0 %vm1033_vm3, %v1032_v25  ;;  %v367_v1 = vld [vmem:[#allocation11 + $0x60] sm:$0xff]  ;;  %v463_v2 = vld [vmem:[#allocation13 + $0x78] sm:$0xff]  ;;  %v462_v3 = vld [vmem:[#allocation13 + $0x70] sm:$0xff]  ;;  %s548_s28 = sshll.u32 %s1034_s27, 4  ;;  %s549_s28 = int_to_ptr.vmem [resolvable:$true] %s548_s28 }
 0x225   :  { %729 = vmatpush3.msra.mxu0 %v370_v24  ;;  %763 = vmatprep.subr.mxu1 %v1032_v25  ;;  %v366_v4 = vld [vmem:[#allocation11 + $0x58] sm:$0xff]  ;;  %v461_v5 = vld [vmem:[#allocation13 + $0x68] sm:$0xff]  ;;  %v365_v6 = vld [vmem:[#allocation11 + $0x50] sm:$0xff]  ;;  %s970_s3 = scalar_lea.vmem %s549_s28, 128  ;;  %p975_p0 = scmp.lt.s32.totalorder %s549_s28, %s549_s28 }
 0x226   :  { %730 = vmatprep.subr.mxu0 %v1032_v25  ;;  %795 = vmatprep.mubr.msk.f32.mxu1 %vm1033_vm3, %v1032_v25  ;;  %v460_v7 = vld [vmem:[#allocation13 + $0x60] sm:$0xff]  ;;  %v364_v8 = vld [vmem:[#allocation11 + $0x48] sm:$0xff]  ;;  %v459_v9 = vld [vmem:[#allocation13 + $0x58] sm:$0xff]  ;;  %p971_p13 = scmp.ne.s32.totalorder %s549_s28, %s970_s3  ;;  %p976_p1 = scmp.lt.s32.totalorder %s970_s3, %s970_s3 }
 0x227   :  { %731 = vmatpush3.msra.mxu0 %v369_v26  ;;  %764 = vmatpush3.msra.mxu1 %v463_v2  ;;  %v363_v10 = vld [vmem:[#allocation11 + $0x40] sm:$0xff]  ;;  %v458_v11 = vld [vmem:[#allocation13 + $0x50] sm:$0xff]  ;;  %v362_v12 = vld [vmem:[#allocation11 + $0x38] sm:$0xff] }
 0x228   :  { %732 = vmatprep.subr.mxu0 %v1032_v25  ;;  %765 = vmatprep.subr.mxu1 %v1032_v25  ;;  %v457_v13 = vld [vmem:[#allocation13 + $0x48] sm:$0xff]  ;;  %v361_v14 = vld [vmem:[#allocation11 + $0x30] sm:$0xff]  ;;  %v456_v15 = vld [vmem:[#allocation13 + $0x40] sm:$0xff]  ;;  %p977_p2 = por %p976_p1, %p975_p0 }
 0x229   :  { %733 = vmatpush3.msra.mxu0 %v368_v0  ;;  %766 = vmatpush3.msra.mxu1 %v462_v3  ;;  %v360_v16 = vld [vmem:[#allocation11 + $0x28] sm:$0xff]  ;;  %v455_v27 = vld [vmem:[#allocation13 + $0x38] sm:$0xff]  ;;  %v359_v28 = vld [vmem:[#allocation11 + $0x20] sm:$0xff] }
 0x22a   :  { %734 = vmatprep.subr.mxu0 %v1032_v25  ;;  %767 = vmatprep.subr.mxu1 %v1032_v25  ;;  %v454_v29 = vld [vmem:[#allocation13 + $0x30] sm:$0xff]  ;;  %v358_v30 = vld [vmem:[#allocation11 + $0x18] sm:$0xff]  ;;  %v453_v31 = vld [vmem:[#allocation13 + $0x28] sm:$0xff]  ;;  %p978_p3 = pnand %p977_p2, %p971_p13 }
 0x22b   :  { %735 = vmatpush3.msra.mxu0 %v367_v1  ;;  %768 = vmatpush3.msra.mxu1 %v461_v5  ;;  %v357_v32 = vld [vmem:[#allocation11 + $0x10] sm:$0xff]  ;;  %v452_v33 = vld [vmem:[#allocation13 + $0x20] sm:$0xff]  ;;  %v356_v34 = vld [vmem:[#allocation11 + $0x8] sm:$0xff] }
 0x22c   :  { %736 = vmatprep.subr.mxu0 %v1032_v25  ;;  %769 = vmatprep.subr.mxu1 %v1032_v25  ;;  %v451_v35 = vld [vmem:[#allocation13 + $0x18] sm:$0xff]  ;;  %v355_v36 = vld [vmem:[#allocation11] sm:$0xff]  ;;  %v450_v37 = vld [vmem:[#allocation13 + $0x10] sm:$0xff] }
 0x22d   :  { %737 = vmatpush3.msra.mxu0 %v366_v4  ;;  %770 = vmatpush3.msra.mxu1 %v460_v7  ;;  %v449_v38 = vld [vmem:[#allocation13 + $0x8] sm:$0xff]  ;;  %v448_v39 = vld [vmem:[#allocation13] sm:$0xff] }
 0x22e   :  { %738 = vmatprep.subr.mxu0 %v1032_v25  ;;  %771 = vmatprep.subr.mxu1 %v1032_v25  ;;  %v572_v40 = vld [vmem:[%s1256_s7] ss:$0 sm:$0xff] }
 0x22f   :  { %739 = vmatpush3.msra.mxu0 %v365_v6  ;;  %772 = vmatpush3.msra.mxu1 %v459_v9  ;;  %v573_v44 = vld [vmem:[%s1258_s9] ss:$0 sm:$0xff] }
 0x230   :  { %740 = vmatprep.subr.mxu0 %v1032_v25  ;;  %773 = vmatprep.subr.mxu1 %v1032_v25 }
 0x231   :  { %741 = vmatpush3.msra.mxu0 %v364_v8  ;;  %774 = vmatpush3.msra.mxu1 %v458_v11 }
 0x232   :  { %742 = vmatprep.subr.mxu0 %v1032_v25  ;;  %775 = vmatprep.subr.mxu1 %v1032_v25 }
 0x233   :  { %743 = vmatpush3.msra.mxu0 %v363_v10  ;;  %776 = vmatpush3.msra.mxu1 %v457_v13 }
 0x234   :  { %744 = vmatprep.subr.mxu0 %v1032_v25  ;;  %777 = vmatprep.subr.mxu1 %v1032_v25 }
 0x235   :  { %745 = vmatpush3.msra.mxu0 %v362_v12  ;;  %778 = vmatpush3.msra.mxu1 %v456_v15 }
 0x236   :  { %746 = vmatprep.subr.mxu0 %v1032_v25  ;;  %779 = vmatprep.subr.mxu1 %v1032_v25 }
 0x237   :  { %747 = vmatpush3.msra.mxu0 %v361_v14  ;;  %780 = vmatpush3.msra.mxu1 %v455_v27 }
 0x238   :  { %748 = vmatprep.subr.mxu0 %v1032_v25  ;;  %781 = vmatprep.subr.mxu1 %v1032_v25 }
 0x239   :  { %749 = vmatpush3.msra.mxu0 %v360_v16  ;;  %782 = vmatpush3.msra.mxu1 %v454_v29 }
 0x23a   :  { %750 = vmatprep.subr.mxu0 %v1032_v25  ;;  %783 = vmatprep.subr.mxu1 %v1032_v25 }
 0x23b   :  { %751 = vmatpush3.msra.mxu0 %v359_v28  ;;  %784 = vmatpush3.msra.mxu1 %v453_v31 }
 0x23c   :  { %752 = vmatprep.subr.mxu0 %v1032_v25  ;;  %785 = vmatprep.subr.mxu1 %v1032_v25 }
 0x23d   :  { %753 = vmatpush3.msra.mxu0 %v358_v30  ;;  %786 = vmatpush3.msra.mxu1 %v452_v33 }
 0x23e   :  { %754 = vmatprep.subr.mxu0 %v1032_v25  ;;  %787 = vmatprep.subr.mxu1 %v1032_v25 }
 0x23f   :  { %755 = vmatpush3.msra.mxu0 %v357_v32  ;;  %788 = vmatpush3.msra.mxu1 %v451_v35 }
 0x240   :  { %756 = vmatprep.subr.mxu0 %v1032_v25  ;;  %789 = vmatprep.subr.mxu1 %v1032_v25 }
 0x241   :  { %757 = vmatpush3.msra.mxu0 %v356_v34  ;;  %790 = vmatpush3.msra.mxu1 %v450_v37 }
 0x242   :  { %758 = vmatprep.subr.mxu0 %v1032_v25  ;;  %791 = vmatprep.subr.mxu1 %v1032_v25 }
 0x243   :  { %759 = vmatpush3.msra.mxu0 %v355_v36  ;;  %792 = vmatpush3.msra.mxu1 %v449_v38 }
 0x244   :  { %761 = vmatmul.mubr.f32.vlgmr.msra.gmra.mxu0 %v1020_v58  ;;  %793 = vmatprep.subr.mxu1 %v1032_v25 }
 0x245   :  { %794 = vmatpush3.msra.mxu1 %v448_v39 }
 0x304   :  { %v444_v41 = vpop.f32.mrf.mxu0 }
 0x305   :  { %v445_v42 = vadd.f32 %v572_v40, %v444_v41 }
 0x306   :  { %v762_v43 = vpop.f32.mrf.mxu0 }
 0x307   :  { %796 = vmatmul.mubr.f32.vlgmr.msra.gmra.mxu1 %v445_v42 }
 0x3c7   :  { %v537_v45 = vpop.f32.mrf.mxu1 }
 0x3c8   :  { %v538_v46 = vadd.f32 %v573_v44, %v537_v45 }
 0x3c9   :  { %v797_v47 = vpop.f32.mrf.mxu1 }
 0x3ca   :  { %541 = vst [vmem:[#allocation14] sm:$0xff] %v538_v46 }
 0x3cb   :  { %981 = shalt.err (!%p978_p3)
}
 0x3cc   :  { %551 = dma.vmem_to_hbm [thread:$0]  %s549_s28, 128, %s1259_s10, [#allocation7]  }
 0x3cd   :  { %1008 = dma.done.wait [#allocation7], 128  }
 0x3ce   :  { %1009 = vsyncadd [#allocation7], 4294967168 }
 0x3cf   :  { %555 = vsyncpa [#allocation6], 1 }
 0x3d0   :  { %556 = vsyncpa [#allocation9], 1 }
 0x3d1   :  { %557 = vsyncpa [#allocation12], 1 }
 0x3d2   :  { %558 = vsyncpa [#allocation7], 1 }

</bundles_post_ra>
